<compile_context>
chip_gen: v7x
topology: tpu7x:2x2x1
jax: 0.10.0
libtpu: 0.0.40
codegen_flags: <defaults>
</compile_context>

<pallas_src>
from functools import partial

import jax
import jax.numpy as jnp
from jax.experimental import pallas as pl
from jax.experimental.pallas import tpu as pltpu


def _round_up(x, m):
    return ((x + m - 1) // m) * m


def _pick_tile_v(Vp):
    # TILE_V <= 2048 keeps a bf16 wo tile at <= Hp*2048*2 bytes (4 MiB/buffer at
    # H=1024), which leaves headroom on v7x's 64 MiB VMEM with double-buffering.
    for t in (2048, 1024, 512, 256, 128):
        if Vp % t == 0:
            return t
    return Vp


def _nbytes(a):
    return int(a.size) * jnp.dtype(a.dtype).itemsize


# ---------------------------------------------------------------------------
# Kernel
# ---------------------------------------------------------------------------
def decoder_kernel(xh_ref, c0_ref, enc_ref, w_ref, b_ref,
                   wc_h_ref, wc_c_ref, bc_ref, wo_ref, bo_ref,
                   pred_ref, h1_ref, c1_ref, comb_ref):
    Hp = c0_ref.shape[-1]
    f32 = jnp.float32

    @pl.when(pl.program_id(0) == 0)
    def _prologue():
        # ---- LSTM cell: one fused MXU matmul over [emb | h0], gate order (i,f,o,g) ----
        gates = jnp.dot(xh_ref[...], w_ref[...],
                        preferred_element_type=f32) + b_ref[...]          # [B, 4Hp] f32
        sig = jax.nn.sigmoid(gates[:, :3 * Hp])                           # i | f | o
        i_g = sig[:, 0 * Hp:1 * Hp]
        f_g = sig[:, 1 * Hp:2 * Hp]
        o_g = sig[:, 2 * Hp:3 * Hp]
        g_g = jnp.tanh(gates[:, 3 * Hp:])
        c1 = f_g * c0_ref[...] + i_g * g_g
        h1 = o_g * jnp.tanh(c1)                                           # [B, Hp] f32
        h1_ref[...] = h1
        c1_ref[...] = c1

        # ---- dot attention (q=1): VPU broadcast-mul + lane reduce, softmax over seq ----
        enc = enc_ref[...].astype(f32)                                    # [B, S, Hp]
        energies = jnp.sum(h1[:, None, :] * enc, axis=-1)                 # [B, S]
        m = jnp.max(energies, axis=-1, keepdims=True)
        e = jnp.exp(energies - m)
        attn = e / jnp.sum(e, axis=-1, keepdims=True)                     # exact division
        context = jnp.sum(attn[:, :, None] * enc, axis=1)                 # [B, Hp]

        # ---- context_combiner + tanh (concat removed: wc split into wc_h / wc_c) ----
        comb = jnp.tanh(
            jnp.dot(h1.astype(wc_h_ref.dtype), wc_h_ref[...], preferred_element_type=f32)
            + jnp.dot(context.astype(wc_c_ref.dtype), wc_c_ref[...], preferred_element_type=f32)
            + bc_ref[...])                                                # [B, Hp] f32
        comb_ref[...] = comb.astype(comb_ref.dtype)

    # ---- output projection, one vocab tile per grid step (wo streamed/double-buffered) ----
    pred_ref[...] = (jnp.dot(comb_ref[...], wo_ref[...], preferred_element_type=f32)
                     + bo_ref[...])                                       # [B, TILE_V]


# ---------------------------------------------------------------------------
# One-time / per-sequence preparation (hoisted out of the per-step path)
# ---------------------------------------------------------------------------
def prepare_params(params):
    """One-time packing: pad lane/sublane-dense, reorder gates (i,f,g,o)->(i,f,o,g),
    fuse W_ih/W_hh, split wc, and cast streamed matmul weights to bf16."""
    E = params["embed"].shape[1]
    H = params["wc"].shape[1]
    V = params["wo"].shape[1]
    Ep, Hp, Vp = _round_up(E, 128), _round_up(H, 128), _round_up(V, 128)
    f32, bf16 = jnp.float32, jnp.bfloat16

    def pack_gates(w):  # [..., 4H] (i,f,g,o) -> [..., 4Hp] (i,f,o,g), zero-padded blocks
        out = jnp.zeros(w.shape[:-1] + (4 * Hp,), f32)
        for dst, src in enumerate((0, 1, 3, 2)):
            out = out.at[..., dst * Hp:dst * Hp + H].set(w[..., src * H:(src + 1) * H])
        return out

    W = jnp.zeros((Ep + Hp, 4 * Hp), f32)
    W = W.at[:E].set(pack_gates(params["w_ih"]))
    W = W.at[Ep:Ep + H].set(pack_gates(params["w_hh"]))

    return {
        "embed": params["embed"].astype(f32),
        "W": W.astype(bf16),
        "b": pack_gates(params["b"]),
        "wc_h": jnp.zeros((Hp, Hp), f32).at[:H, :H].set(params["wc"][:H]).astype(bf16),
        "wc_c": jnp.zeros((Hp, Hp), f32).at[:H, :H].set(params["wc"][H:]).astype(bf16),
        "bc": jnp.zeros((1, Hp), f32).at[:, :H].set(params["bc"]),
        "wo": jnp.zeros((Hp, Vp), f32).at[:H, :V].set(params["wo"]).astype(bf16),
        "bo": jnp.zeros((1, Vp), f32).at[:, :V].set(params["bo"]),
    }


def prepare_enc(enc_outs, Bp, Hp):
    """Per-sequence prep: [S, B, H] -> padded [Bp, S, Hp] bf16 (not repeated per step)."""
    S, B, H = enc_outs.shape
    enc_bsh = jnp.transpose(enc_outs, (1, 0, 2)).astype(jnp.bfloat16)
    return jnp.zeros((Bp, S, Hp), jnp.bfloat16).at[:B, :, :H].set(enc_bsh)


# ---------------------------------------------------------------------------
# Per-step forward
# ---------------------------------------------------------------------------
@partial(jax.jit, static_argnames=("vocab",))
def decoder_step(token_ids, hidden, enc_p, packed, *, vocab):
    """token_ids: [B] int32; hidden: (h, c) each [1, B, H] fp32; enc_p: [Bp, S, Hp] bf16."""
    h0, c0 = hidden
    B = token_ids.shape[0]
    H = h0.shape[-1]
    Bp, S, Hp = enc_p.shape
    Ep = packed["W"].shape[0] - Hp
    Vp = packed["wo"].shape[1]
    E = packed["embed"].shape[1]
    V = vocab
    TILE_V = _pick_tile_v(Vp)
    f32, bf16 = jnp.float32, jnp.bfloat16

    # Embedding lookup + dropout(eval)=identity (gather stays in plain JAX).
    # TODO(synk): fuse the gather via PrefetchScalarGridSpec once the decode loop
    #             moves inside the kernel.
    emb = jnp.take(packed["embed"], token_ids, axis=0)                    # [B, E] f32

    # Tiny per-step activation tiles, zero-padded (exact no-ops through the math).
    xh = jnp.zeros((Bp, Ep + Hp), bf16)
    xh = xh.at[:B, :E].set(emb.astype(bf16))
    xh = xh.at[:B, Ep:Ep + H].set(h0[0].astype(bf16))
    c0_p = jnp.zeros((Bp, Hp), f32).at[:B, :H].set(c0[0])

    # Resident-set arithmetic -> explicit scoped-VMEM limit (v5e default is only 16 MiB).
    resident_bytes = sum(_nbytes(a) for a in
                         (xh, c0_p, enc_p, packed["W"], packed["b"], packed["wc_h"],
                          packed["wc_c"], packed["bc"])) + 3 * Bp * Hp * 4
    tiled_bytes = 2 * (Hp * TILE_V * 2 + TILE_V * 4 + Bp * TILE_V * 4)    # 2x buffered
    vmem_limit = int(min(max(4 * (resident_bytes + tiled_bytes), 16 * 2**20), 48 * 2**20))

    flops = (2 * Bp * (Ep + Hp) * 4 * Hp       # fused LSTM matmul
             + 4 * Bp * S * Hp                 # attention energies + context (VPU/XLU)
             + 4 * Bp * Hp * Hp                # combiner (two matmuls)
             + 2 * Bp * Hp * Vp)               # output projection
    transcendentals = Bp * (4 * Hp + Hp + S + Hp)
    bytes_accessed = int(resident_bytes + Vp * (Hp * 2 + 4) + Bp * Vp * 4)
    cost = pl.CostEstimate(flops=flops, transcendentals=transcendentals,
                           bytes_accessed=bytes_accessed)

    preds_p, h1_p, c1_p = pl.pallas_call(
        decoder_kernel,
        out_shape=(
            jax.ShapeDtypeStruct((Bp, Vp), f32),
            jax.ShapeDtypeStruct((Bp, Hp), f32),
            jax.ShapeDtypeStruct((Bp, Hp), f32),
        ),
        grid_spec=pltpu.PrefetchScalarGridSpec(
            num_scalar_prefetch=0,
            grid=(Vp // TILE_V,),
            in_specs=[
                pl.BlockSpec((Bp, Ep + Hp), lambda j: (0, 0)),        # xh      (bf16)
                pl.BlockSpec((Bp, Hp), lambda j: (0, 0)),             # c0      (f32)
                pl.BlockSpec((Bp, S, Hp), lambda j: (0, 0, 0)),       # enc     (bf16)
                pl.BlockSpec((Ep + Hp, 4 * Hp), lambda j: (0, 0)),    # fused W (bf16)
                pl.BlockSpec((1, 4 * Hp), lambda j: (0, 0)),          # gate b  (f32)
                pl.BlockSpec((Hp, Hp), lambda j: (0, 0)),             # wc_h    (bf16)
                pl.BlockSpec((Hp, Hp), lambda j: (0, 0)),             # wc_c    (bf16)
                pl.BlockSpec((1, Hp), lambda j: (0, 0)),              # bc      (f32)
                pl.BlockSpec((Hp, TILE_V), lambda j: (0, j)),         # wo tile (bf16)
                pl.BlockSpec((1, TILE_V), lambda j: (0, j)),          # bo tile (f32)
            ],
            out_specs=(
                pl.BlockSpec((Bp, TILE_V), lambda j: (0, j)),         # pred tile
                pl.BlockSpec((Bp, Hp), lambda j: (0, 0)),             # h1 (resident)
                pl.BlockSpec((Bp, Hp), lambda j: (0, 0)),             # c1 (resident)
            ),
            scratch_shapes=[pltpu.VMEM((Bp, Hp), bf16)],              # comb
        ),
        compiler_params=pltpu.CompilerParams(
            # h1/c1/comb are computed once at j==0 and revisited across vocab tiles.
            # TODO(synk): on v7x, split the vocab axis across the 2 TCs ("parallel")
            #             with the prologue duplicated or factored into its own call.
            dimension_semantics=("arbitrary",),
            vmem_limit_bytes=vmem_limit),
        cost_estimate=cost,
    )(xh, c0_p, enc_p, packed["W"], packed["b"], packed["wc_h"], packed["wc_c"],
      packed["bc"], packed["wo"], packed["bo"])

    preds = preds_p[:B, :V]
    return preds, (h1_p[:B, :H][None], c1_p[:B, :H][None])


# ---------------------------------------------------------------------------
# Pure-JAX reference (mirrors the PyTorch forward, attn='dot', eval mode, fp32)
# ---------------------------------------------------------------------------
def reference_forward(inputs, hidden, enc_outs, params):
    h0, c0 = hidden
    H = h0.shape[-1]
    emb = jnp.take(params["embed"], inputs, axis=0)
    gates = emb @ params["w_ih"] + h0[0] @ params["w_hh"] + params["b"]
    i_g = jax.nn.sigmoid(gates[:, 0:H])
    f_g = jax.nn.sigmoid(gates[:, H:2 * H])
    g_g = jnp.tanh(gates[:, 2 * H:3 * H])
    o_g = jax.nn.sigmoid(gates[:, 3 * H:4 * H])
    c1 = f_g * c0[0] + i_g * g_g
    h1 = o_g * jnp.tanh(c1)
    energies = jnp.sum(h1[None] * enc_outs, axis=2)            # [S, B]
    attn = jax.nn.softmax(energies, axis=0)
    context = jnp.sum(attn[:, :, None] * enc_outs, axis=0)     # [B, H]
    comb = jnp.tanh(jnp.concatenate([h1, context], axis=1) @ params["wc"] + params["bc"])
    preds = comb @ params["wo"] + params["bo"]
    return preds, (h1[None], c1[None])


def init_params(key, vocab, embed_dim, hidden_dim):
    ks = jax.random.split(key, 10)
    H, E, V = hidden_dim, embed_dim, vocab
    k_lstm = 1.0 / jnp.sqrt(H)
    u = lambda k, shape, b: jax.random.uniform(k, shape, jnp.float32, -b, b)
    b_ih = u(ks[3], (4 * H,), k_lstm)
    b_hh = u(ks[4], (4 * H,), k_lstm)
    return {
        "embed": jax.random.normal(ks[0], (V, E), jnp.float32),
        # PyTorch stores weight_ih as [4H, E]; we keep the transposed [E, 4H] layout.
        "w_ih": u(ks[1], (E, 4 * H), k_lstm),
        "w_hh": u(ks[2], (H, 4 * H), k_lstm),
        "b": (b_ih + b_hh)[None, :],                           # [1, 4H]
        "wc": u(ks[5], (2 * H, H), 1.0 / jnp.sqrt(2 * H)),
        "bc": u(ks[6], (1, H), 1.0 / jnp.sqrt(2 * H)),
        "wo": u(ks[7], (H, V), 1.0 / jnp.sqrt(H)),
        "bo": u(ks[8], (1, V), 1.0 / jnp.sqrt(H)),
    }
    # TODO(synk): dropout implemented as eval-mode identity (training-mode RNG mask not included).


if __name__ == "__main__":
    B, S, E, H, V = 4, 8, 32, 32, 64
    key = jax.random.PRNGKey(0)
    k_in, k_h, k_c, k_enc, k_p = jax.random.split(key, 5)

    inputs = jax.random.randint(k_in, (B,), 0, V, dtype=jnp.int32)
    h0 = jax.random.normal(k_h, (1, B, H), jnp.float32)
    c0 = jax.random.normal(k_c, (1, B, H), jnp.float32)
    enc_outs = jax.random.normal(k_enc, (S, B, H), jnp.float32)
    params = init_params(k_p, V, E, H)

    packed = prepare_params(params)                      # one-time weight packing
    Bp = _round_up(B, 8)
    Hp = packed["wc_h"].shape[0]
    enc_p = prepare_enc(enc_outs, Bp, Hp)                # once per sequence

    preds, (h1, c1) = decoder_step(inputs, (h0, c0), enc_p, packed, vocab=V)
    jax.block_until_ready((preds, h1, c1))

    ref_preds, (ref_h1, ref_c1) = reference_forward(inputs, (h0, c0), enc_outs, params)
    assert preds.shape == (B, V) and h1.shape == (1, B, H) and c1.shape == (1, B, H)
    # Tolerances reflect bf16 quantization of streamed matmul operands (weights,
    # enc, xh, comb); accumulation and all elementwise math remain fp32.
    assert jnp.allclose(preds, ref_preds, atol=5e-2, rtol=5e-2), \
        float(jnp.max(jnp.abs(preds - ref_preds)))
    assert jnp.allclose(h1, ref_h1, atol=3e-2, rtol=3e-2), \
        float(jnp.max(jnp.abs(h1 - ref_h1)))
    assert jnp.allclose(c1, ref_c1, atol=3e-2, rtol=3e-2), \
        float(jnp.max(jnp.abs(c1 - ref_c1)))
    print("KERNEL_OK")
</pallas_src>

<mosaic_0001>
module attributes {stable_mosaic.version = 11 : i64} {
  func.func @decoder_kernel(%arg0: i32, %arg1: memref<8x256xbf16, #tpu.memory_space<vmem>>, %arg2: memref<8x128xf32, #tpu.memory_space<vmem>>, %arg3: memref<8x8x128xbf16, #tpu.memory_space<vmem>>, %arg4: memref<256x512xbf16, #tpu.memory_space<vmem>>, %arg5: memref<1x512xf32, #tpu.memory_space<vmem>>, %arg6: memref<128x128xbf16, #tpu.memory_space<vmem>>, %arg7: memref<128x128xbf16, #tpu.memory_space<vmem>>, %arg8: memref<1x128xf32, #tpu.memory_space<vmem>>, %arg9: memref<128x128xbf16, #tpu.memory_space<vmem>>, %arg10: memref<1x128xf32, #tpu.memory_space<vmem>>, %arg11: memref<8x128xf32, #tpu.memory_space<vmem>>, %arg12: memref<8x128xf32, #tpu.memory_space<vmem>>, %arg13: memref<8x128xf32, #tpu.memory_space<vmem>>, %arg14: memref<8x128xbf16, #tpu.memory_space<vmem>>) attributes {dimension_semantics = [#tpu.dimension_semantics<arbitrary>], iteration_bounds = array<i64: 1>, scalar_prefetch = 0 : i64, scratch_operands = 1 : i64, tpu.core_type = #tpu.core_type<tc>, window_params = [{pipeline_mode = #tpu.pipeline_mode<synchronous>, transform_indices = @transform_0, window_bounds = array<i64: 8, 256>}, {pipeline_mode = #tpu.pipeline_mode<synchronous>, transform_indices = @transform_1, window_bounds = array<i64: 8, 128>}, {pipeline_mode = #tpu.pipeline_mode<synchronous>, transform_indices = @transform_2, window_bounds = array<i64: 8, 8, 128>}, {pipeline_mode = #tpu.pipeline_mode<synchronous>, transform_indices = @transform_3, window_bounds = array<i64: 256, 512>}, {pipeline_mode = #tpu.pipeline_mode<synchronous>, transform_indices = @transform_4, window_bounds = array<i64: 1, 512>}, {pipeline_mode = #tpu.pipeline_mode<synchronous>, transform_indices = @transform_5, window_bounds = array<i64: 128, 128>}, {pipeline_mode = #tpu.pipeline_mode<synchronous>, transform_indices = @transform_6, window_bounds = array<i64: 128, 128>}, {pipeline_mode = #tpu.pipeline_mode<synchronous>, transform_indices = @transform_7, window_bounds = array<i64: 1, 128>}, {transform_indices = @transform_8, window_bounds = array<i64: 128, 128>}, {transform_indices = @transform_9, window_bounds = array<i64: 1, 128>}, {transform_indices = @transform_10, window_bounds = array<i64: 8, 128>}, {pipeline_mode = #tpu.pipeline_mode<synchronous>, transform_indices = @transform_11, window_bounds = array<i64: 8, 128>}, {pipeline_mode = #tpu.pipeline_mode<synchronous>, transform_indices = @transform_12, window_bounds = array<i64: 8, 128>}]} {
    %c0_i32 = arith.constant 0 : i32
    %0 = arith.cmpi eq, %arg0, %c0_i32 : i32
    %1 = arith.extui %0 : i1 to i32
    %c0_i32_0 = arith.constant 0 : i32
    %2 = arith.cmpi ne, %1, %c0_i32_0 : i32
    scf.if %2 {
      %c0_8 = arith.constant 0 : index
      %c0_9 = arith.constant 0 : index
      %10 = vector.load %arg1[%c0_8, %c0_9] : memref<8x256xbf16, #tpu.memory_space<vmem>>, vector<8x256xbf16>
      %c0_10 = arith.constant 0 : index
      %c0_11 = arith.constant 0 : index
      %11 = vector.load %arg4[%c0_10, %c0_11] : memref<256x512xbf16, #tpu.memory_space<vmem>>, vector<256x512xbf16>
      %cst_12 = arith.constant dense<0.000000e+00> : vector<8x512xf32>
      %12 = tpu.matmul %10, %11, %cst_12 {dimension_numbers = #tpu.dot_dimension_numbers<[1], [0], [0], [1], [0, 0, 1, 1], [], []>} : vector<8x256xbf16>, vector<256x512xbf16>, vector<8x512xf32> -> vector<8x512xf32>
      %c0_13 = arith.constant 0 : index
      %c0_14 = arith.constant 0 : index
      %13 = vector.load %arg5[%c0_13, %c0_14] : memref<1x512xf32, #tpu.memory_space<vmem>>, vector<1x512xf32>
      %14 = vector.broadcast %13 : vector<1x512xf32> to vector<8x512xf32>
      %15 = arith.addf %12, %14 : vector<8x512xf32>
      %16 = vector.extract_strided_slice %15 {offsets = [0, 0], sizes = [8, 384], strides = [1, 1]} : vector<8x512xf32> to vector<8x384xf32>
      %17 = arith.negf %16 : vector<8x384xf32>
      %18 = math.exp %17 : vector<8x384xf32>
      %cst_15 = arith.constant 1.000000e+00 : f32
      %19 = vector.broadcast %cst_15 : f32 to vector<8x384xf32>
      %20 = arith.addf %19, %18 : vector<8x384xf32>
      %21 = arith.divf %19, %20 : vector<8x384xf32>
      %22 = vector.extract_strided_slice %21 {offsets = [0, 0], sizes = [8, 128], strides = [1, 1]} : vector<8x384xf32> to vector<8x128xf32>
      %23 = vector.extract_strided_slice %21 {offsets = [0, 128], sizes = [8, 128], strides = [1, 1]} : vector<8x384xf32> to vector<8x128xf32>
      %24 = vector.extract_strided_slice %21 {offsets = [0, 256], sizes = [8, 128], strides = [1, 1]} : vector<8x384xf32> to vector<8x128xf32>
      %25 = vector.extract_strided_slice %15 {offsets = [0, 384], sizes = [8, 128], strides = [1, 1]} : vector<8x512xf32> to vector<8x128xf32>
      %26 = math.tanh %25 : vector<8x128xf32>
      %c0_16 = arith.constant 0 : index
      %c0_17 = arith.constant 0 : index
      %27 = vector.load %arg2[%c0_16, %c0_17] : memref<8x128xf32, #tpu.memory_space<vmem>>, vector<8x128xf32>
      %28 = arith.mulf %23, %27 : vector<8x128xf32>
      %29 = arith.mulf %22, %26 : vector<8x128xf32>
      %30 = arith.addf %28, %29 : vector<8x128xf32>
      %31 = math.tanh %30 : vector<8x128xf32>
      %32 = arith.mulf %24, %31 : vector<8x128xf32>
      %c0_18 = arith.constant 0 : index
      %c0_19 = arith.constant 0 : index
      %33 = vector.load %arg12[%c0_18, %c0_19] : memref<8x128xf32, #tpu.memory_space<vmem>>, vector<8x128xf32>
      tpu.vector_store %arg12[%c0_18, %c0_19], %32 {strides = array<i32>} : memref<8x128xf32, #tpu.memory_space<vmem>>, vector<8x128xf32>,
      %c0_20 = arith.constant 0 : index
      %c0_21 = arith.constant 0 : index
      %34 = vector.load %arg13[%c0_20, %c0_21] : memref<8x128xf32, #tpu.memory_space<vmem>>, vector<8x128xf32>
      tpu.vector_store %arg13[%c0_20, %c0_21], %30 {strides = array<i32>} : memref<8x128xf32, #tpu.memory_space<vmem>>, vector<8x128xf32>,
      %c0_22 = arith.constant 0 : index
      %c0_23 = arith.constant 0 : index
      %c0_24 = arith.constant 0 : index
      %35 = vector.load %arg3[%c0_22, %c0_23, %c0_24] : memref<8x8x128xbf16, #tpu.memory_space<vmem>>, vector<8x8x128xbf16>
      %36 = arith.extf %35 : vector<8x8x128xbf16> to vector<8x8x128xf32>
      %37 = vector.shape_cast %32 : vector<8x128xf32> to vector<8x1x128xf32>
      %38 = vector.broadcast %37 : vector<8x1x128xf32> to vector<8x8x128xf32>
      %39 = arith.mulf %38, %36 : vector<8x8x128xf32>
      %cst_25 = arith.constant dense<0.000000e+00> : vector<8x8xf32>
      %40 = vector.multi_reduction <add>, %39, %cst_25 [2] : vector<8x8x128xf32> to vector<8x8xf32>
      %cst_26 = arith.constant dense<0xFF800000> : vector<8xf32>
      %41 = vector.multi_reduction <maximumf>, %40, %cst_26 [1] : vector<8x8xf32> to vector<8xf32>
      %42 = vector.shape_cast %41 : vector<8xf32> to vector<8x1xf32>
      %43 = vector.broadcast %42 : vector<8x1xf32> to vector<8x8xf32>
      %44 = arith.subf %40, %43 : vector<8x8xf32>
      %45 = math.exp %44 : vector<8x8xf32>
      %cst_27 = arith.constant dense<0.000000e+00> : vector<8xf32>
      %46 = vector.multi_reduction <add>, %45, %cst_27 [1] : vector<8x8xf32> to vector<8xf32>
      %47 = vector.shape_cast %46 : vector<8xf32> to vector<8x1xf32>
      %48 = vector.broadcast %47 : vector<8x1xf32> to vector<8x8xf32>
      %49 = arith.divf %45, %48 : vector<8x8xf32>
      %50 = vector.shape_cast %49 : vector<8x8xf32> to vector<8x8x1xf32>
      %51 = vector.broadcast %50 : vector<8x8x1xf32> to vector<8x8x128xf32>
      %52 = arith.mulf %51, %36 : vector<8x8x128xf32>
      %cst_28 = arith.constant dense<0.000000e+00> : vector<8x128xf32>
      %53 = vector.multi_reduction <add>, %52, %cst_28 [1] : vector<8x8x128xf32> to vector<8x128xf32>
      %54 = arith.truncf %32 : vector<8x128xf32> to vector<8x128xbf16>
      %c0_29 = arith.constant 0 : index
      %c0_30 = arith.constant 0 : index
      %55 = vector.load %arg6[%c0_29, %c0_30] : memref<128x128xbf16, #tpu.memory_space<vmem>>, vector<128x128xbf16>
      %cst_31 = arith.constant dense<0.000000e+00> : vector<8x128xf32>
      %56 = tpu.matmul %54, %55, %cst_31 {dimension_numbers = #tpu.dot_dimension_numbers<[1], [0], [0], [1], [0, 0, 1, 1], [], []>} : vector<8x128xbf16>, vector<128x128xbf16>, vector<8x128xf32> -> vector<8x128xf32>
      %57 = arith.truncf %53 : vector<8x128xf32> to vector<8x128xbf16>
      %c0_32 = arith.constant 0 : index
      %c0_33 = arith.constant 0 : index
      %58 = vector.load %arg7[%c0_32, %c0_33] : memref<128x128xbf16, #tpu.memory_space<vmem>>, vector<128x128xbf16>
      %cst_34 = arith.constant dense<0.000000e+00> : vector<8x128xf32>
      %59 = tpu.matmul %57, %58, %cst_34 {dimension_numbers = #tpu.dot_dimension_numbers<[1], [0], [0], [1], [0, 0, 1, 1], [], []>} : vector<8x128xbf16>, vector<128x128xbf16>, vector<8x128xf32> -> vector<8x128xf32>
      %60 = arith.addf %56, %59 : vector<8x128xf32>
      %c0_35 = arith.constant 0 : index
      %c0_36 = arith.constant 0 : index
      %61 = vector.load %arg8[%c0_35, %c0_36] : memref<1x128xf32, #tpu.memory_space<vmem>>, vector<1x128xf32>
      %62 = vector.broadcast %61 : vector<1x128xf32> to vector<8x128xf32>
      %63 = arith.addf %60, %62 : vector<8x128xf32>
      %64 = math.tanh %63 : vector<8x128xf32>
      %65 = arith.truncf %64 : vector<8x128xf32> to vector<8x128xbf16>
      %c0_37 = arith.constant 0 : index
      %c0_38 = arith.constant 0 : index
      %66 = vector.load %arg14[%c0_37, %c0_38] : memref<8x128xbf16, #tpu.memory_space<vmem>>, vector<8x128xbf16>
      tpu.vector_store %arg14[%c0_37, %c0_38], %65 {strides = array<i32>} : memref<8x128xbf16, #tpu.memory_space<vmem>>, vector<8x128xbf16>,
    } else {
    }
    %c0 = arith.constant 0 : index
    %c0_1 = arith.constant 0 : index
    %3 = vector.load %arg14[%c0, %c0_1] : memref<8x128xbf16, #tpu.memory_space<vmem>>, vector<8x128xbf16>
    %c0_2 = arith.constant 0 : index
    %c0_3 = arith.constant 0 : index
    %4 = vector.load %arg9[%c0_2, %c0_3] : memref<128x128xbf16, #tpu.memory_space<vmem>>, vector<128x128xbf16>
    %cst = arith.constant dense<0.000000e+00> : vector<8x128xf32>
    %5 = tpu.matmul %3, %4, %cst {dimension_numbers = #tpu.dot_dimension_numbers<[1], [0], [0], [1], [0, 0, 1, 1], [], []>} : vector<8x128xbf16>, vector<128x128xbf16>, vector<8x128xf32> -> vector<8x128xf32>
    %c0_4 = arith.constant 0 : index
    %c0_5 = arith.constant 0 : index
    %6 = vector.load %arg10[%c0_4, %c0_5] : memref<1x128xf32, #tpu.memory_space<vmem>>, vector<1x128xf32>
    %7 = vector.broadcast %6 : vector<1x128xf32> to vector<8x128xf32>
    %8 = arith.addf %5, %7 : vector<8x128xf32>
    %c0_6 = arith.constant 0 : index
    %c0_7 = arith.constant 0 : index
    %9 = vector.load %arg11[%c0_6, %c0_7] : memref<8x128xf32, #tpu.memory_space<vmem>>, vector<8x128xf32>
    tpu.vector_store %arg11[%c0_6, %c0_7], %8 {strides = array<i32>} : memref<8x128xf32, #tpu.memory_space<vmem>>, vector<8x128xf32>,
    return
  }
  func.func @transform_0(%arg0: i32) -> (i32, i32) {
    %c0_i32 = arith.constant 0 : i32
    %c0_i32_0 = arith.constant 0 : i32
    %c0_i32_1 = arith.constant 0 : i32
    return %c0_i32, %c0_i32_0 : i32, i32
  }
  func.func @transform_1(%arg0: i32) -> (i32, i32) {
    %c0_i32 = arith.constant 0 : i32
    %c0_i32_0 = arith.constant 0 : i32
    %c0_i32_1 = arith.constant 0 : i32
    return %c0_i32, %c0_i32_0 : i32, i32
  }
  func.func @transform_2(%arg0: i32) -> (i32, i32, i32) {
    %c0_i32 = arith.constant 0 : i32
    %c0_i32_0 = arith.constant 0 : i32
    %c0_i32_1 = arith.constant 0 : i32
    %c0_i32_2 = arith.constant 0 : i32
    return %c0_i32, %c0_i32_0, %c0_i32_1 : i32, i32, i32
  }
  func.func @transform_3(%arg0: i32) -> (i32, i32) {
    %c0_i32 = arith.constant 0 : i32
    %c0_i32_0 = arith.constant 0 : i32
    %c0_i32_1 = arith.constant 0 : i32
    return %c0_i32, %c0_i32_0 : i32, i32
  }
  func.func @transform_4(%arg0: i32) -> (i32, i32) {
    %c0_i32 = arith.constant 0 : i32
    %c0_i32_0 = arith.constant 0 : i32
    %c0_i32_1 = arith.constant 0 : i32
    return %c0_i32, %c0_i32_0 : i32, i32
  }
  func.func @transform_5(%arg0: i32) -> (i32, i32) {
    %c0_i32 = arith.constant 0 : i32
    %c0_i32_0 = arith.constant 0 : i32
    %c0_i32_1 = arith.constant 0 : i32
    return %c0_i32, %c0_i32_0 : i32, i32
  }
  func.func @transform_6(%arg0: i32) -> (i32, i32) {
    %c0_i32 = arith.constant 0 : i32
    %c0_i32_0 = arith.constant 0 : i32
    %c0_i32_1 = arith.constant 0 : i32
    return %c0_i32, %c0_i32_0 : i32, i32
  }
  func.func @transform_7(%arg0: i32) -> (i32, i32) {
    %c0_i32 = arith.constant 0 : i32
    %c0_i32_0 = arith.constant 0 : i32
    %c0_i32_1 = arith.constant 0 : i32
    return %c0_i32, %c0_i32_0 : i32, i32
  }
  func.func @transform_8(%arg0: i32) -> (i32, i32) {
    %c0_i32 = arith.constant 0 : i32
    %c0_i32_0 = arith.constant 0 : i32
    return %c0_i32, %arg0 : i32, i32
  }
  func.func @transform_9(%arg0: i32) -> (i32, i32) {
    %c0_i32 = arith.constant 0 : i32
    %c0_i32_0 = arith.constant 0 : i32
    return %c0_i32, %arg0 : i32, i32
  }
  func.func @transform_10(%arg0: i32) -> (i32, i32) {
    %c0_i32 = arith.constant 0 : i32
    %c0_i32_0 = arith.constant 0 : i32
    return %c0_i32, %arg0 : i32, i32
  }
  func.func @transform_11(%arg0: i32) -> (i32, i32) {
    %c0_i32 = arith.constant 0 : i32
    %c0_i32_0 = arith.constant 0 : i32
    %c0_i32_1 = arith.constant 0 : i32
    return %c0_i32, %c0_i32_0 : i32, i32
  }
  func.func @transform_12(%arg0: i32) -> (i32, i32) {
    %c0_i32 = arith.constant 0 : i32
    %c0_i32_0 = arith.constant 0 : i32
    %c0_i32_1 = arith.constant 0 : i32
    return %c0_i32, %c0_i32_0 : i32, i32
  }
}

</mosaic_0001>

<bundles_post_ra>
// kernel: decoder_step.1
= control target key start
LH: loop header
LB: loop body
LE: loop exit
PB: predicated region body
PF: predicated region fallthrough
CT: control target
= control target key end

     0   :  { %18 = vsyncpa [#allocation4], 0  ;;  %s2282_s0 = inlined_call_operand.vmem [shape: bf16[8,256], index: 0, kind: input, shape index: {}]   ;;  %s2283_s1 = inlined_call_operand.vmem [shape: f32[8,128], index: 1, kind: input, shape index: {}]   ;;  %s2284_s2 = inlined_call_operand.vmem [shape: bf16[8,8,128], index: 2, kind: input, shape index: {}]   ;;  %s2285_s3 = inlined_call_operand.hbm [shape: bf16[256,512], index: 3, kind: input, shape index: {}]   ;;  %s2286_s4 = inlined_call_operand.vmem [shape: f32[1,512], index: 4, kind: input, shape index: {}]   ;;  %s2287_s5 = inlined_call_operand.vmem [shape: bf16[128,128], index: 5, kind: input, shape index: {}]   ;;  %s2288_s6 = inlined_call_operand.vmem [shape: bf16[128,128], index: 6, kind: input, shape index: {}]   ;;  %s2289_s7 = inlined_call_operand.vmem [shape: f32[1,128], index: 7, kind: input, shape index: {}]   ;;  %s2290_s8 = inlined_call_operand.hbm [shape: bf16[128,128], index: 8, kind: input, shape index: {}]   ;;  %s2291_s9 = inlined_call_operand.vmem [shape: f32[1,128], index: 9, kind: input, shape index: {}]   ;;  %s2292_s10 = inlined_call_operand.vmem [shape: f32[8,128], index: 10, kind: output, shape index: {0}]   ;;  %s2293_s11 = inlined_call_operand.vmem [shape: f32[8,128], index: 11, kind: output, shape index: {1}]   ;;  %s2294_s12 = inlined_call_operand.vmem [shape: f32[8,128], index: 12, kind: output, shape index: {2}]  }
   0x1   :  { %19 = vsyncpa [#allocation6], 0  ;;  %s1891_s21 = smov [#allocation3]   ;;  %s1843_s25 = scalar_lea.hbm %s2285_s3, 8192 }
   0x2   :  { %s31_s22 = sshll.u32 %s1891_s21, 4  ;;  %p1844_p0 = scmp.ne.s32.totalorder %s2285_s3, %s1843_s25  ;;  %s32_s22 = int_to_ptr.vmem [resolvable:$true] %s31_s22 }
   0x3   :  { %p1847_p1 = scmp.lt.u32.totalorder %s1843_s25, %s2285_s3 }
   0x5   :  { %p1849_p2 = pnand %p1847_p1, %p1844_p0 }
   0x7   :  { %1852 = shalt.err (!%p1849_p2)
}
   0x8   :  { %s1853_s30 = scalar_lea.vmem %s32_s22, 8192  ;;  %p1858_p4 = scmp.lt.s32.totalorder %s32_s22, %s32_s22 }
   0x9   :  { %p1854_p3 = scmp.ne.s32.totalorder %s32_s22, %s1853_s30  ;;  %p1859_p5 = scmp.lt.s32.totalorder %s1853_s30, %s1853_s30 }
   0xb   :  { %p1860_p6 = por %p1859_p5, %p1858_p4 }
   0xd   :  { %p1861_p7 = pnand %p1860_p6, %p1854_p3 }
   0xf   :  { %1864 = shalt.err (!%p1861_p7)
}
  0x10   :  { %s1892_s13 = smov 256   ;;  %s1893_s14 = smov 16  }
  0x11   :  { %37 = dma.hbm_to_vmem [thread:$0]  %s2285_s3, 8192, %s32_s22, [#allocation4], %s1892_s13, %s1892_s13, %s1893_s14  }
  0x12   :  { %s1894_s17 = smov [#allocation5]   ;;  %s1865_s21 = scalar_lea.hbm %s2290_s8, 1024 }
  0x13   :  { %s51_s18 = sshll.u32 %s1894_s17, 4  ;;  %p1866_p8 = scmp.ne.s32.totalorder %s2290_s8, %s1865_s21  ;;  %s52_s18 = int_to_ptr.vmem [resolvable:$true] %s51_s18 }
  0x14   :  { %p1869_p9 = scmp.lt.u32.totalorder %s1865_s21, %s2290_s8 }
  0x16   :  { %p1871_p10 = pnand %p1869_p9, %p1866_p8 }
  0x18   :  { %1874 = shalt.err (!%p1871_p10)
}
  0x19   :  { %s1875_s27 = scalar_lea.vmem %s52_s18, 1024  ;;  %p1880_p12 = scmp.lt.s32.totalorder %s52_s18, %s52_s18 }
  0x1a   :  { %p1876_p11 = scmp.ne.s32.totalorder %s52_s18, %s1875_s27  ;;  %p1881_p13 = scmp.lt.s32.totalorder %s1875_s27, %s1875_s27 }
  0x1c   :  { %p1882_p0 = por %p1881_p13, %p1880_p12 }
  0x1e   :  { %p1883_p1 = pnand %p1882_p0, %p1876_p11 }
  0x20   :  { %1886 = shalt.err (!%p1883_p1)
}
  0x21   :  { %s1895_s3 = smov 64   ;;  %s1896_s22 = smov 4  }
  0x22   :  { %57 = dma.hbm_to_vmem [thread:$0]  %s2290_s8, 1024, %s52_s18, [#allocation6], %s1895_s3, %s1895_s3, %s1896_s22  }
  0x23   :  { %1887 = dma.done.wait [#allocation4], 8192  }
  0x24   :  { %1888 = vsyncadd [#allocation4], 4294959104 }
  0x25   :  { %1889 = dma.done.wait [#allocation6], 1024  }
  0x26   :  { %1890 = vsyncadd [#allocation6], 4294966272  ;;  %v1671_v0 = vld [vmem:[#allocation3 + $0x4] ss:$16 sps:$4 sm:$0xff]   ;;  %v1673_v1 = vld [vmem:[#allocation3] ss:$16 sps:$4 sm:$0xff]  }
  0x27   :  { %485 = vmatprep.subr.bf16.mxu0 %v1671_v0  ;;  %v1674_v2 = vld [vmem:[#allocation3 + $0x24] ss:$16 sps:$4 sm:$0xff]   ;;  %v1676_v3 = vld [vmem:[#allocation3 + $0x20] ss:$16 sps:$4 sm:$0xff]   ;;  %v1682_v5 = vld [vmem:[#allocation3 + $0xc] ss:$16 sps:$4 sm:$0xff]  }
  0x28   :  { %486 = vmatpush1.bf16.msra.mxu0 %v1673_v1  ;;  %v1677_v4 = vld [vmem:[#allocation3 + $0x44] ss:$16 sps:$4 sm:$0xff]   ;;  %v1685_v6 = vld [vmem:[#allocation3 + $0x8] ss:$16 sps:$4 sm:$0xff]   ;;  %v1679_v7 = vld [vmem:[#allocation3 + $0x40] ss:$16 sps:$4 sm:$0xff]   ;;  %526 = vmatprep.subr.bf16.mxu1 %v1682_v5 }
  0x29   :  { %487 = vmatprep.subr.bf16.mxu0 %v1674_v2  ;;  %v1680_v8 = vld [vmem:[#allocation3 + $0x64] ss:$16 sps:$4 sm:$0xff]   ;;  %527 = vmatpush1.bf16.msra.mxu1 %v1685_v6  ;;  %v1688_v9 = vld [vmem:[#allocation3 + $0x2c] ss:$16 sps:$4 sm:$0xff]   ;;  %v1691_v10 = vld [vmem:[#allocation3 + $0x28] ss:$16 sps:$4 sm:$0xff]  }
  0x2a   :  { %528 = vmatprep.subr.bf16.mxu1 %v1688_v9  ;;  %v1684_v11 = vld [vmem:[#allocation3 + $0x60] ss:$16 sps:$4 sm:$0xff]   ;;  %v1686_v12 = vld [vmem:[#allocation3 + $0x84] ss:$16 sps:$4 sm:$0xff]   ;;  %v1694_v13 = vld [vmem:[#allocation3 + $0x4c] ss:$16 sps:$4 sm:$0xff]  }
  0x2b   :  { %v1697_v14 = vld [vmem:[#allocation3 + $0x48] ss:$16 sps:$4 sm:$0xff]   ;;  %v1700_v15 = vld [vmem:[#allocation3 + $0x6c] ss:$16 sps:$4 sm:$0xff]   ;;  %v1690_v16 = vld [vmem:[#allocation3 + $0x80] ss:$16 sps:$4 sm:$0xff]  }
  0x2c   :  { %488 = vmatpush1.bf16.msra.mxu0 %v1676_v3  ;;  %v1692_v17 = vld [vmem:[#allocation3 + $0xa4] ss:$16 sps:$4 sm:$0xff]   ;;  %v1703_v18 = vld [vmem:[#allocation3 + $0x68] ss:$16 sps:$4 sm:$0xff]   ;;  %v1706_v19 = vld [vmem:[#allocation3 + $0x8c] ss:$16 sps:$4 sm:$0xff]  }
  0x2d   :  { %489 = vmatprep.subr.bf16.mxu0 %v1677_v4  ;;  %529 = vmatpush1.bf16.msra.mxu1 %v1691_v10  ;;  %v1696_v20 = vld [vmem:[#allocation3 + $0xa0] ss:$16 sps:$4 sm:$0xff]   ;;  %v1698_v21 = vld [vmem:[#allocation3 + $0xc4] ss:$16 sps:$4 sm:$0xff]   ;;  %v1709_v22 = vld [vmem:[#allocation3 + $0x88] ss:$16 sps:$4 sm:$0xff]  }
  0x2e   :  { %530 = vmatprep.subr.bf16.mxu1 %v1694_v13  ;;  %v1712_v23 = vld [vmem:[#allocation3 + $0xac] ss:$16 sps:$4 sm:$0xff]   ;;  %v1702_v24 = vld [vmem:[#allocation3 + $0xc0] ss:$16 sps:$4 sm:$0xff]   ;;  %v1704_v25 = vld [vmem:[#allocation3 + $0xe4] ss:$16 sps:$4 sm:$0xff]  }
  0x2f   :  { %v1715_v26 = vld [vmem:[#allocation3 + $0xa8] ss:$16 sps:$4 sm:$0xff]   ;;  %v1718_v27 = vld [vmem:[#allocation3 + $0xcc] ss:$16 sps:$4 sm:$0xff]   ;;  %v1708_v28 = vld [vmem:[#allocation3 + $0xe0] ss:$16 sps:$4 sm:$0xff]  }
  0x30   :  { %490 = vmatpush1.bf16.msra.mxu0 %v1679_v7  ;;  %v1710_v29 = vld [vmem:[#allocation3 + $0x104] ss:$16 sps:$4 sm:$0xff]   ;;  %v1721_v30 = vld [vmem:[#allocation3 + $0xc8] ss:$16 sps:$4 sm:$0xff]   ;;  %v1724_v31 = vld [vmem:[#allocation3 + $0xec] ss:$16 sps:$4 sm:$0xff]  }
  0x31   :  { %491 = vmatprep.subr.bf16.mxu0 %v1680_v8  ;;  %531 = vmatpush1.bf16.msra.mxu1 %v1697_v14  ;;  %v1714_v32 = vld [vmem:[#allocation3 + $0x100] ss:$16 sps:$4 sm:$0xff]   ;;  %v1716_v33 = vld [vmem:[#allocation3 + $0x124] ss:$16 sps:$4 sm:$0xff]   ;;  %v1727_v34 = vld [vmem:[#allocation3 + $0xe8] ss:$16 sps:$4 sm:$0xff]  }
  0x32   :  { %532 = vmatprep.subr.bf16.mxu1 %v1700_v15  ;;  %v1730_v35 = vld [vmem:[#allocation3 + $0x10c] ss:$16 sps:$4 sm:$0xff]   ;;  %v1720_v36 = vld [vmem:[#allocation3 + $0x120] ss:$16 sps:$4 sm:$0xff]   ;;  %v1722_v37 = vld [vmem:[#allocation3 + $0x144] ss:$16 sps:$4 sm:$0xff]  }
  0x33   :  { %v1733_v38 = vld [vmem:[#allocation3 + $0x108] ss:$16 sps:$4 sm:$0xff]   ;;  %v1736_v39 = vld [vmem:[#allocation3 + $0x12c] ss:$16 sps:$4 sm:$0xff]   ;;  %v1726_v40 = vld [vmem:[#allocation3 + $0x140] ss:$16 sps:$4 sm:$0xff]  }
  0x34   :  { %492 = vmatpush1.bf16.msra.mxu0 %v1684_v11  ;;  %v71_v41 = vld [vmem:[%s2282_s0] sm:$0xff]  ;;  %v1728_v42 = vld [vmem:[#allocation3 + $0x164] ss:$16 sps:$4 sm:$0xff]   ;;  %v1739_v44 = vld [vmem:[#allocation3 + $0x128] ss:$16 sps:$4 sm:$0xff]   ;;  %v1897_v4 = vmov 0.0  }
  0x35   :  { %493 = vmatprep.subr.bf16.mxu0 %v1686_v12  ;;  %533 = vmatpush1.bf16.msra.mxu1 %v1703_v18  ;;  %v1459_v43 = vcombine.high %v71_v41, %v71_v41  ;;  %v1732_v45 = vld [vmem:[#allocation3 + $0x160] ss:$16 sps:$4 sm:$0xff]   ;;  %v1742_v46 = vld [vmem:[#allocation3 + $0x14c] ss:$16 sps:$4 sm:$0xff]   ;;  %v1734_v47 = vld [vmem:[#allocation3 + $0x184] ss:$16 sps:$4 sm:$0xff]   ;;  %v1458_v1 = vcombine.low %v71_v41, %v71_v41  ;;  %v138_v12 = vlaneseq }
  0x36   :  { %534 = vmatprep.subr.bf16.mxu1 %v1706_v19  ;;  %v1745_v48 = vld [vmem:[#allocation3 + $0x148] ss:$16 sps:$4 sm:$0xff]   ;;  %v1748_v49 = vld [vmem:[#allocation3 + $0x16c] ss:$16 sps:$4 sm:$0xff]   ;;  %v1738_v50 = vld [vmem:[#allocation3 + $0x180] ss:$16 sps:$4 sm:$0xff]  }
  0x37   :  { %517 = vmatprep.mubr.bf16.mxu0 %v1459_v43  ;;  %558 = vmatprep.mubr.bf16.mxu1 %v1459_v43  ;;  %v1740_v51 = vld [vmem:[#allocation3 + $0x1a4] ss:$16 sps:$4 sm:$0xff]   ;;  %v1751_v52 = vld [vmem:[#allocation3 + $0x168] ss:$16 sps:$4 sm:$0xff]   ;;  %v1754_v53 = vld [vmem:[#allocation3 + $0x18c] ss:$16 sps:$4 sm:$0xff]  }
  0x38   :  { %494 = vmatpush1.bf16.msra.mxu0 %v1690_v16  ;;  %v1744_v54 = vld [vmem:[#allocation3 + $0x1a0] ss:$16 sps:$4 sm:$0xff]   ;;  %v1746_v55 = vld [vmem:[#allocation3 + $0x1c4] ss:$16 sps:$4 sm:$0xff]   ;;  %v1757_v56 = vld [vmem:[#allocation3 + $0x188] ss:$16 sps:$4 sm:$0xff]  }
  0x39   :  { %495 = vmatprep.subr.bf16.mxu0 %v1692_v17  ;;  %535 = vmatpush1.bf16.msra.mxu1 %v1709_v22  ;;  %v1760_v57 = vld [vmem:[#allocation3 + $0x1ac] ss:$16 sps:$4 sm:$0xff]   ;;  %v1750_v58 = vld [vmem:[#allocation3 + $0x1c0] ss:$16 sps:$4 sm:$0xff]   ;;  %v1752_v59 = vld [vmem:[#allocation3 + $0x1e4] ss:$16 sps:$4 sm:$0xff]  }
  0x3a   :  { %536 = vmatprep.subr.bf16.mxu1 %v1712_v23  ;;  %v1762_v60 = vld [vmem:[#allocation3 + $0x1a8] ss:$16 sps:$4 sm:$0xff]   ;;  %v1763_v61 = vld [vmem:[#allocation3 + $0x1cc] ss:$16 sps:$4 sm:$0xff]   ;;  %v1756_v62 = vld [vmem:[#allocation3 + $0x1e0] ss:$16 sps:$4 sm:$0xff]  }
  0x3b   :  { %v1765_v63 = vld [vmem:[#allocation3 + $0x1c8] ss:$16 sps:$4 sm:$0xff]   ;;  %v1766_v0 = vld [vmem:[#allocation3 + $0x1ec] ss:$16 sps:$4 sm:$0xff]   ;;  %vm1898_vm0 = vmmov 0   ;;  %v2031_v13 = vshrl.u32 %v138_v12, 7 }
  0x3c   :  { %496 = vmatpush1.bf16.msra.mxu0 %v1696_v20  ;;  %v1768_v2 = vld [vmem:[#allocation3 + $0x1e8] ss:$16 sps:$4 sm:$0xff]   ;;  %v1769_v3 = vld [vmem:[%s2287_s5] sm:$0xff]   ;;  %v1771_v6 = vld [vmem:[%s2287_s5 + $0x10] sm:$0xff]   ;;  %vm766_vm1 = vcmask 1041409   ;;  %vm768_vm2 = vcmask 1042434  }
  0x3d   :  { %497 = vmatprep.subr.bf16.mxu0 %v1698_v21  ;;  %537 = vmatpush1.bf16.msra.mxu1 %v1715_v26  ;;  %v1770_v5 = vld [vmem:[%s2287_s5 + $0x8] sm:$0xff]   ;;  %v1772_v7 = vld [vmem:[%s2287_s5 + $0x18] sm:$0xff]   ;;  %v1773_v8 = vld [vmem:[%s2287_s5 + $0x20] sm:$0xff]   ;;  %v2034_v14 = vsub.s32 0, %v2031_v13  ;;  %v2040_v16 = vsub.s32 1, %v2031_v13  ;;  %v2045_v19 = vsub.s32 2, %v2031_v13 }
  0x3e   :  { %538 = vmatprep.subr.bf16.mxu1 %v1718_v27  ;;  %v1774_v9 = vld [vmem:[%s2287_s5 + $0x28] sm:$0xff]   ;;  %v1775_v10 = vld [vmem:[%s2287_s5 + $0x30] sm:$0xff]   ;;  %v1776_v11 = vld [vmem:[%s2287_s5 + $0x38] sm:$0xff]   ;;  %vm770_vm3 = vcmask 1043459   ;;  %vm772_vm4 = vcmask 1044484   ;;  %vm774_vm5 = vcmask 1045509  }
  0x3f   :  { %v136_v15 = vld [vmem:[%s2286_s4] sm:$0xf]  ;;  %vm776_vm6 = vcmask 1046534   ;;  %vm778_vm7 = vcmask 1047559   ;;  %vm781_vm8 = vcmask 64512  }
  0x40   :  { %498 = vmatpush1.bf16.msra.mxu0 %v1702_v24  ;;  %v141_v17 = vrot.slane %v136_v15, %v2034_v14  ;;  %v145_v18 = vrot.slane %v136_v15, %v2040_v16  ;;  %v149_v27 = vrot.slane %v136_v15, %v2045_v19 }
  0x41   :  { %499 = vmatprep.subr.bf16.mxu0 %v1704_v25  ;;  %539 = vmatpush1.bf16.msra.mxu1 %v1721_v30 }
  0x42   :  { %540 = vmatprep.subr.bf16.mxu1 %v1724_v31 }
  0x44   :  { %500 = vmatpush1.bf16.msra.mxu0 %v1708_v28 }
  0x45   :  { %501 = vmatprep.subr.bf16.mxu0 %v1710_v29  ;;  %541 = vmatpush1.bf16.msra.mxu1 %v1727_v34  ;;  %v2049_v29 = vsub.s32 3, %v2031_v13 }
  0x46   :  { %542 = vmatprep.subr.bf16.mxu1 %v1730_v35 }
  0x47   :  { %v153_v34 = vrot.slane %v136_v15, %v2049_v29 }
  0x48   :  { %502 = vmatpush1.bf16.msra.mxu0 %v1714_v32 }
  0x49   :  { %503 = vmatprep.subr.bf16.mxu0 %v1716_v33  ;;  %543 = vmatpush1.bf16.msra.mxu1 %v1733_v38 }
  0x4a   :  { %544 = vmatprep.subr.bf16.mxu1 %v1736_v39 }
  0x4c   :  { %504 = vmatpush1.bf16.msra.mxu0 %v1720_v36 }
  0x4d   :  { %505 = vmatprep.subr.bf16.mxu0 %v1722_v37  ;;  %545 = vmatpush1.bf16.msra.mxu1 %v1739_v44  ;;  %v586_v44 = vld [vmem:[%s2283_s1] sm:$0xff] }
  0x4e   :  { %546 = vmatprep.subr.bf16.mxu1 %v1742_v46 }
  0x50   :  { %506 = vmatpush1.bf16.msra.mxu0 %v1726_v40 }
  0x51   :  { %507 = vmatprep.subr.bf16.mxu0 %v1728_v42  ;;  %547 = vmatpush1.bf16.msra.mxu1 %v1745_v48 }
  0x52   :  { %548 = vmatprep.subr.bf16.mxu1 %v1748_v49 }
  0x54   :  { %508 = vmatpush1.bf16.msra.mxu0 %v1732_v45 }
  0x55   :  { %509 = vmatprep.subr.bf16.mxu0 %v1734_v47  ;;  %549 = vmatpush1.bf16.msra.mxu1 %v1751_v52 }
  0x56   :  { %550 = vmatprep.subr.bf16.mxu1 %v1754_v53 }
  0x58   :  { %510 = vmatpush1.bf16.msra.mxu0 %v1738_v50 }
  0x59   :  { %511 = vmatprep.subr.bf16.mxu0 %v1740_v51  ;;  %551 = vmatpush1.bf16.msra.mxu1 %v1757_v56  ;;  %v1899_v51 = vmov 1966171168  }
  0x5a   :  { %552 = vmatprep.subr.bf16.mxu1 %v1760_v57  ;;  %v613_v52 = vunpack.c.l.s4 %v1899_v51 }
  0x5c   :  { %512 = vmatpush1.bf16.msra.mxu0 %v1744_v54  ;;  %v614_v53 = vunpack.c.0.s8 %v613_v52 }
  0x5d   :  { %513 = vmatprep.subr.bf16.mxu0 %v1746_v55  ;;  %553 = vmatpush1.bf16.msra.mxu1 %v1762_v60 }
  0x5e   :  { %554 = vmatprep.subr.bf16.mxu1 %v1763_v61  ;;  %v617_v55 = vsub.s32 %v614_v53, %v2031_v13 }
  0x60   :  { %514 = vmatpush1.bf16.msra.mxu0 %v1750_v58  ;;  %v2062_v58 = vld [vmem:[%s2284_s2] sm:$0xff]  }
  0x61   :  { %515 = vmatprep.subr.bf16.mxu0 %v1752_v59  ;;  %555 = vmatpush1.bf16.msra.mxu1 %v1765_v63  ;;  %v1555_v63 = vunpack.c.l.bf16 %v2062_v58 }
  0x62   :  { %556 = vmatprep.subr.bf16.mxu1 %v1766_v0 }
  0x64   :  { %516 = vmatpush1.bf16.msra.mxu0 %v1756_v62  ;;  %v2070_v62 = vld [vmem:[%s2284_s2 + $0x8] sm:$0xff]  }
  0x65   :  { %557 = vmatpush1.bf16.msra.mxu1 %v1768_v2  ;;  %1599 = vmatprep.subr.bf16.mxu0 %v1897_v4 }
  0x66   :  { %1619 = vmatprep.subr.bf16.mxu1 %v1897_v4 }
  0x67   :  { %518 = vmatmul.mubr.bf16.vlgmr.msra.gmra.mrb[0].mxu0 %v1458_v1 }
  0x68   :  { %559 = vmatmul.mubr.bf16.vlgmr.msra.gmra.mrb[0].mxu1 %v1458_v1  ;;  %1615 = vmatprep.mubr.msk.bf16.mxu0 %vm1898_vm0, %v1897_v4 }
  0x69   :  { %1620 = vmatpush3.bf16.msra.mxu1 %v1769_v3  ;;  %1635 = vmatprep.mubr.msk.bf16.mxu1 %vm1898_vm0, %v1897_v4 }
  0x6a   :  { %1621 = vmatprep.subr.bf16.mxu1 %v1897_v4 }
  0x6d   :  { %1622 = vmatpush3.bf16.msra.mxu1 %v1770_v5  ;;  %v1559_v5 = vunpack.c.l.bf16 %v2070_v62 }
  0x6e   :  { %1623 = vmatprep.subr.bf16.mxu1 %v1897_v4 }
  0x71   :  { %1624 = vmatpush3.bf16.msra.mxu1 %v1771_v6 }
  0x72   :  { %1625 = vmatprep.subr.bf16.mxu1 %v1897_v4 }
  0x75   :  { %1626 = vmatpush3.bf16.msra.mxu1 %v1772_v7 }
  0x76   :  { %1627 = vmatprep.subr.bf16.mxu1 %v1897_v4 }
  0x79   :  { %1628 = vmatpush3.bf16.msra.mxu1 %v1773_v8  ;;  %v1556_v8 = vunpack.c.h.bf16 %v2062_v58 }
  0x7a   :  { %1629 = vmatprep.subr.bf16.mxu1 %v1897_v4 }
  0x7d   :  { %1630 = vmatpush3.bf16.msra.mxu1 %v1774_v9 }
  0x7e   :  { %1631 = vmatprep.subr.bf16.mxu1 %v1897_v4 }
  0x81   :  { %1632 = vmatpush3.bf16.msra.mxu1 %v1775_v10 }
  0x82   :  { %1633 = vmatprep.subr.bf16.mxu1 %v1897_v4 }
  0x85   :  { %1634 = vmatpush3.bf16.msra.mxu1 %v1776_v11 }
 0x13a   :  { %v519_v20 = vpop.f32.mrb[0].mxu0 }
 0x13b   :  { %v520_v21 = vadd.f32 %v519_v20, %v141_v17  ;;  %v521_v22 = vpop.f32.mrb[1].mxu0  ;;  %v560_v30 = vpop.f32.mrb[0].mxu1  ;;  %v2083_v20 = vld [vmem:[%s2284_s2 + $0x10] sm:$0xff]  }
 0x13c   :  { %v522_v23 = vadd.f32 %v521_v22, %v145_v18  ;;  %v523_v24 = vpop.f32.mrb[2].mxu0  ;;  %v562_v31 = vpop.f32.mrb[1].mxu1  ;;  %v561_v32 = vadd.f32 %v560_v30, %v149_v27  ;;  %v1560_v22 = vunpack.c.h.bf16 %v2070_v62  ;;  %v2096_v30 = vld [vmem:[%s2284_s2 + $0x18] sm:$0xff]  }
 0x13d   :  { %v1524_v25 = vmul.f32 -1.442695, %v520_v21  ;;  %v524_v26 = vpop.f32.mrb[3].mxu0  ;;  %v564_v33 = vpop.f32.mrb[2].mxu1  ;;  %v563_v37 = vadd.f32 %v562_v31, %v153_v34 }
 0x13e   :  { %v1525_v28 = vmul.f32 -1.442695, %v522_v23  ;;  %v565_v35 = vpop.f32.mrb[3].mxu1  ;;  %v1526_v36 = vmul.f32 -1.442695, %v561_v32  ;;  %v1563_v26 = vunpack.c.l.bf16 %v2083_v20  ;;  %v1564_v32 = vunpack.c.h.bf16 %v2083_v20 }
 0x13f   :  { %1793 = vpow2.f32 %v1524_v25 }
 0x140   :  { %1795 = vpow2.f32 %v1525_v28 }
 0x141   :  { %1797 = vpow2.f32 %v1526_v36  ;;  %v1567_v36 = vunpack.c.l.bf16 %v2096_v30 }
 0x142   :  { %1799 = vtanh.f32 %v563_v37 }
 0x149   :  { %v1794_v38 = vpop.eup %1793 }
 0x14a   :  { %v1796_v39 = vpop.eup %1795  ;;  %v576_v40 = vadd.f32 1.0, %v1794_v38 }
 0x14b   :  { %v577_v41 = vadd.f32 1.0, %v1796_v39  ;;  %v1798_v42 = vpop.eup %1797  ;;  %v1568_v39 = vunpack.c.h.bf16 %v2096_v30 }
 0x14c   :  { %1801 = vrcp.f32 %v576_v40  ;;  %v1800_v43 = vpop.eup %1799  ;;  %v578_v46 = vadd.f32 1.0, %v1798_v42 }
 0x14d   :  { %1803 = vrcp.f32 %v577_v41 }
 0x14e   :  { %1805 = vrcp.f32 %v578_v46 }
 0x156   :  { %v1802_v45 = vpop.eup %1801 }
 0x157   :  { %v1804_v47 = vpop.eup %1803  ;;  %v588_v48 = vmul.f32 %v1802_v45, %v1800_v43  ;;  %v733_v43 = vand.u32 127, %v138_v12 }
 0x158   :  { %v587_v49 = vmul.f32 %v1804_v47, %v586_v44  ;;  %v1806_v54 = vpop.eup %1805 }
 0x159   :  { %v2116_v45 = vsub.s32 %v733_v43, %v2031_v13  ;;  %v812_v43 = vsub.s32 6, %v2031_v13 }
 0x15a   :  { %v589_v50 = vadd.f32 %v588_v48, %v587_v49 }
 0x15c   :  { %1807 = vtanh.f32 %v589_v50  ;;  %593 = vst [vmem:[%s2294_s12] sm:$0xff] %v589_v50 }
 0x166   :  { %v1808_v56 = vpop.eup %1807 }
 0x167   :  { %v591_v57 = vmul.f32 %v1808_v56, %v1806_v54 }
 0x169   :  { %592 = vst [vmem:[%s2293_s11] sm:$0xff] %v591_v57  ;;  %v1078_v59 = vpack.c.bf16 %v591_v57, %v591_v57  ;;  %v618_v60 = vrot.slane %v591_v57, %v617_v55  ;;  %v611_v61 = vcombine.high %v591_v57, %v591_v57 }
 0x16b   :  { %1636 = vmatmul.mubr.bf16.vlgmr.msra.gmra.mrb[4].mxu1 %v1078_v59  ;;  %v634_v0 = vrot.slane %v618_v60, %v617_v55  ;;  %v626_v1 = vcombine.high %v618_v60, %v618_v60  ;;  %v625_v2 = vrot.slane %v611_v61, %v617_v55 }
 0x16d   :  { %v663_v3 = vrot.slane %v634_v0, %v2034_v14  ;;  %v656_v6 = vcombine.high %v634_v0, %v634_v0  ;;  %v648_v7 = vrot.slane %v626_v1, %v617_v55  ;;  %v641_v9 = vrot.slane %v625_v2, %v617_v55 }
 0x16e   :  { %v627_v10 = vcombine.high %v625_v2, %v625_v2 }
 0x16f   :  { %v700_v11 = vmul.f32 %v1555_v63, %v663_v3  ;;  %v671_v15 = vrot.slane %v656_v6, %v2034_v14  ;;  %v667_v17 = vrot.slane %v648_v7, %v2034_v14  ;;  %v658_v18 = vcombine.high %v648_v7, %v648_v7 }
 0x170   :  { %v655_v24 = vrot.slane %v627_v10, %v617_v55  ;;  %v679_v27 = vrot.slane %v641_v9, %v2034_v14  ;;  %v657_v28 = vcombine.high %v641_v9, %v641_v9  ;;  %v1900_v10 = vmov 0  }
 0x171   :  { %708 = vadd.xlane.f32.xlu0 %v700_v11  ;;  %v702_v21 = vmul.f32 %v1559_v5, %v671_v15  ;;  %v675_v23 = vrot.slane %v658_v18, %v2034_v14  ;;  %v701_v25 = vmul.f32 %v1556_v8, %v667_v17  ;;  %1669 = vset.pattern.permute.xlu1 %v1900_v10 }
 0x172   :  { %v683_v33 = vrot.slane %v655_v24, %v2034_v14  ;;  %v659_v34 = vcombine.high %v655_v24, %v655_v24  ;;  %v704_v35 = vmul.f32 %v1563_v26, %v679_v27  ;;  %v687_v37 = vrot.slane %v657_v28, %v2034_v14  ;;  %1670 = vset.pattern.permute.xlu0 %v1900_v10 }
 0x173   :  { %712 = vadd.xlane.f32.xlu1 %v702_v21  ;;  %v703_v31 = vmul.f32 %v1560_v22, %v675_v23  ;;  %v804_v27 = vsub.s32 4, %v2031_v13 }
 0x174   :  { %v705_v38 = vmul.f32 %v1564_v32, %v683_v33  ;;  %v691_v40 = vrot.slane %v659_v34, %v2034_v14  ;;  %v706_v41 = vmul.f32 %v1567_v36, %v687_v37 }
 0x175   :  { %710 = vadd.xlane.f32.xlu0 %v701_v25 }
 0x176   :  { %v707_v42 = vmul.f32 %v1568_v39, %v691_v40 }
 0x177   :  { %714 = vadd.xlane.f32.xlu1 %v703_v31 }
 0x179   :  { %716 = vadd.xlane.f32.xlu0 %v704_v35 }
 0x17b   :  { %718 = vadd.xlane.f32.xlu1 %v705_v38  ;;  %v808_v38 = vsub.s32 5, %v2031_v13 }
 0x17d   :  { %720 = vadd.xlane.f32.xlu0 %v706_v41 }
 0x17f   :  { %722 = vadd.xlane.f32.xlu1 %v707_v42 }
 0x1fe   :  { %v709_v44 = vpop.xlane.xlu0 %708 }
 0x1ff   :  { %v737_v48 = vrot.slane %v709_v44, %v2116_v45 }
 0x200   :  { %v713_v46 = vpop.xlane.xlu1 %712 }
 0x201   :  { %v745_v50 = vrot.slane %v713_v46, %v2116_v45 }
 0x202   :  { %v711_v47 = vpop.xlane.xlu0 %710 }
 0x203   :  { %v741_v49 = vrot.slane %v711_v47, %v2116_v45 }
 0x204   :  { %v715_v51 = vpop.xlane.xlu1 %714 }
 0x205   :  { %v767_v52 = vsel %vm766_vm1, %v741_v49, %v737_v48  ;;  %v749_v12 = vrot.slane %v715_v51, %v2116_v45 }
 0x206   :  { %v769_v53 = vsel %vm768_vm2, %v745_v50, %v767_v52  ;;  %v717_v54 = vpop.xlane.xlu0 %716 }
 0x207   :  { %v771_v55 = vsel %vm770_vm3, %v749_v12, %v769_v53  ;;  %v753_v56 = vrot.slane %v717_v54, %v2116_v45 }
 0x208   :  { %v719_v57 = vpop.xlane.xlu1 %718 }
 0x209   :  { %v773_v59 = vsel %vm772_vm4, %v753_v56, %v771_v55  ;;  %v757_v60 = vrot.slane %v719_v57, %v2116_v45 }
 0x20a   :  { %v721_v61 = vpop.xlane.xlu0 %720 }
 0x20b   :  { %v761_v0 = vrot.slane %v721_v61, %v2116_v45  ;;  %v775_v1 = vsel %vm774_vm5, %v757_v60, %v773_v59 }
 0x20c   :  { %v723_v2 = vpop.xlane.xlu1 %722 }
 0x20d   :  { %v765_v3 = vrot.slane %v723_v2, %v2116_v45  ;;  %v777_v6 = vsel %vm776_vm6, %v761_v0, %v775_v1 }
 0x20f   :  { %v779_v7 = vsel %vm778_vm7, %v765_v3, %v777_v6 }
 0x210   :  { %v782_v9 = vsel %vm781_vm8, %v779_v7, -inf }
 0x211   :  { %783 = vmax.xlane.f32.xlu0 %v782_v9 }
 0x23e   :  { %v2134_v11 = vpop.f32.mrb[4].mxu1 }
 0x23f   :  { %v1637_v15 = vpop.f32.mrb[5].mxu1 }
 0x240   :  { %v1317_v17 = vpop.f32.mrb[6].mxu1 }
 0x241   :  { %v1638_v18 = vpop.f32.mrb[7].mxu1 }
 0x29e   :  { %v784_v21 = vpop.xlane.xlu0 %783 }
 0x29f   :  { %v789_v23 = vrot.slane %v784_v21, %v2034_v14  ;;  %v793_v24 = vrot.slane %v784_v21, %v2040_v16  ;;  %v797_v25 = vrot.slane %v784_v21, %v2045_v19  ;;  %v801_v28 = vrot.slane %v784_v21, %v2049_v29 }
 0x2a0   :  { %v805_v40 = vrot.slane %v784_v21, %v804_v27  ;;  %v809_v48 = vrot.slane %v784_v21, %v808_v38 }
 0x2a1   :  { %v826_v31 = vsub.f32 %v709_v44, %v789_v23  ;;  %v827_v33 = vsub.f32 %v711_v47, %v793_v24  ;;  %v828_v34 = vsub.f32 %v713_v46, %v797_v25  ;;  %v829_v41 = vsub.f32 %v715_v51, %v801_v28 }
 0x2a2   :  { %v830_v49 = vsub.f32 %v717_v54, %v805_v40  ;;  %v816_v46 = vsub.s32 7, %v2031_v13  ;;  %v813_v47 = vrot.slane %v784_v21, %v812_v43  ;;  %v831_v50 = vsub.f32 %v719_v57, %v809_v48  ;;  %v1777_v13 = vld [vmem:[%s2288_s6] sm:$0xff]  }
 0x2a3   :  { %v834_v35 = vmul.f32 1.442695, %v826_v31  ;;  %v836_v37 = vmul.f32 1.442695, %v827_v33  ;;  %v838_v42 = vmul.f32 1.442695, %v828_v34  ;;  %1600 = vmatpush3.bf16.msra.mxu0 %v1777_v13 }
 0x2a4   :  { %v840_v44 = vmul.f32 1.442695, %v829_v41  ;;  %v842_v52 = vmul.f32 1.442695, %v830_v49  ;;  %v817_v53 = vrot.slane %v784_v21, %v816_v46  ;;  %v832_v55 = vsub.f32 %v721_v61, %v813_v47  ;;  %1601 = vmatprep.subr.bf16.mxu0 %v1897_v4 }
 0x2a5   :  { %1809 = vpow2.f32 %v834_v35  ;;  %v844_v54 = vmul.f32 1.442695, %v831_v50 }
 0x2a6   :  { %1811 = vpow2.f32 %v836_v37  ;;  %v833_v59 = vsub.f32 %v723_v2, %v817_v53  ;;  %v846_v57 = vmul.f32 1.442695, %v832_v55 }
 0x2a7   :  { %1813 = vpow2.f32 %v838_v42 }
 0x2a8   :  { %1815 = vpow2.f32 %v840_v44  ;;  %v848_v0 = vmul.f32 1.442695, %v833_v59 }
 0x2a9   :  { %1817 = vpow2.f32 %v842_v52 }
 0x2aa   :  { %1819 = vpow2.f32 %v844_v54 }
 0x2ab   :  { %1821 = vpow2.f32 %v846_v57 }
 0x2ac   :  { %1823 = vpow2.f32 %v848_v0 }
 0x2af   :  { %v1810_v51 = vpop.eup %1809 }
 0x2b0   :  { %v2150_v12 = vpop.eup %1811  ;;  %859 = vperm.xlu1 %1669, %v1810_v51  }
 0x2b1   :  { %862 = vperm.xlu0 %1670, %v2150_v12   ;;  %v2155_v56 = vpop.eup %1813 }
 0x2b2   :  { %v2158_v60 = vpop.eup %1815 }
 0x2b3   :  { %v2161_v1 = vpop.eup %1817 }
 0x2b4   :  { %865 = vperm.xlu1 %1669, %v2155_v56   ;;  %v2164_v61 = vpop.eup %1819 }
 0x2b5   :  { %v2167_v3 = vpop.eup %1821 }
 0x2b6   :  { %v2170_v2 = vpop.eup %1823 }
 0x2b8   :  { %868 = vperm.xlu1 %1669, %v2158_v60  }
 0x2bc   :  { %871 = vperm.xlu1 %1669, %v2161_v1  }
 0x2c0   :  { %874 = vperm.xlu1 %1669, %v2164_v61  }
 0x2c4   :  { %877 = vperm.xlu1 %1669, %v2167_v3  }
 0x2c8   :  { %880 = vperm.xlu1 %1669, %v2170_v2  }
 0x32f   :  { %v860_v6 = vpop.permute.xlu1 %859 }
 0x330   :  { %v863_v15 = vpop.permute.xlu0 %862  ;;  %v885_v21 = vrot.slane %v860_v6, %v2116_v45 }
 0x331   :  { %v889_v18 = vrot.slane %v863_v15, %v2116_v45 }
 0x333   :  { %v866_v7 = vpop.permute.xlu1 %865  ;;  %v914_v31 = vsel %vm766_vm1, %v889_v18, %v885_v21  ;;  %v1784_v18 = vld [vmem:[%s2288_s6 + $0x38] sm:$0xff]  }
 0x334   :  { %v893_v23 = vrot.slane %v866_v7, %v2116_v45 }
 0x336   :  { %v915_v34 = vsel %vm768_vm2, %v893_v23, %v914_v31 }
 0x337   :  { %v869_v9 = vpop.permute.xlu1 %868 }
 0x338   :  { %v897_v24 = vrot.slane %v869_v9, %v2116_v45 }
 0x33a   :  { %v916_v37 = vsel %vm770_vm3, %v897_v24, %v915_v34 }
 0x33b   :  { %v872_v10 = vpop.permute.xlu1 %871 }
 0x33c   :  { %v901_v25 = vrot.slane %v872_v10, %v2116_v45 }
 0x33e   :  { %v917_v40 = vsel %vm772_vm4, %v901_v25, %v916_v37 }
 0x33f   :  { %v875_v17 = vpop.permute.xlu1 %874 }
 0x340   :  { %v905_v33 = vrot.slane %v875_v17, %v2116_v45  ;;  %v1783_v17 = vld [vmem:[%s2288_s6 + $0x30] sm:$0xff]  }
 0x342   :  { %v918_v42 = vsel %vm774_vm5, %v905_v33, %v917_v40 }
 0x343   :  { %v878_v28 = vpop.permute.xlu1 %877 }
 0x344   :  { %v909_v35 = vrot.slane %v878_v28, %v2116_v45 }
 0x346   :  { %v919_v49 = vsel %vm776_vm6, %v909_v35, %v918_v42 }
 0x347   :  { %v881_v41 = vpop.permute.xlu1 %880 }
 0x348   :  { %v913_v48 = vrot.slane %v881_v41, %v2116_v45 }
 0x34a   :  { %v920_v44 = vsel %vm778_vm7, %v913_v48, %v919_v49 }
 0x34b   :  { %v922_v47 = vsel %vm781_vm8, %v920_v44, 0.0 }
 0x34c   :  { %923 = vadd.xlane.f32.xlu1 %v922_v47 }
 0x3d9   :  { %v924_v50 = vpop.xlane.xlu1 %923 }
 0x3da   :  { %v929_v52 = vrot.slane %v924_v50, %v2034_v14  ;;  %v933_v53 = vrot.slane %v924_v50, %v2040_v16  ;;  %v937_v55 = vrot.slane %v924_v50, %v2045_v19  ;;  %v941_v54 = vrot.slane %v924_v50, %v2049_v29 }
 0x3db   :  { %v945_v59 = vrot.slane %v924_v50, %v804_v27  ;;  %v949_v14 = vrot.slane %v924_v50, %v808_v38  ;;  %v953_v19 = vrot.slane %v924_v50, %v812_v43  ;;  %v957_v27 = vrot.slane %v924_v50, %v816_v46 }
 0x3dc   :  { %1825 = vrcp.f32 %v929_v52 }
 0x3dd   :  { %1827 = vrcp.f32 %v933_v53 }
 0x3de   :  { %1829 = vrcp.f32 %v937_v55 }
 0x3df   :  { %1831 = vrcp.f32 %v941_v54 }
 0x3e0   :  { %1833 = vrcp.f32 %v945_v59 }
 0x3e1   :  { %1835 = vrcp.f32 %v949_v14 }
 0x3e2   :  { %1837 = vrcp.f32 %v953_v19 }
 0x3e3   :  { %1839 = vrcp.f32 %v957_v27 }
 0x3e6   :  { %v1826_v45 = vpop.eup %1825 }
 0x3e7   :  { %v967_v57 = vmul.f32 %v1826_v45, %v1810_v51  ;;  %v1828_v0 = vpop.eup %1827 }
 0x3e8   :  { %v969_v16 = vmul.f32 %v1828_v0, %v2150_v12  ;;  %v1830_v6 = vpop.eup %1829 }
 0x3e9   :  { %984 = vperm.xlu0 %1670, %v967_v57   ;;  %v971_v29 = vmul.f32 %v1830_v6, %v2155_v56  ;;  %v1832_v7 = vpop.eup %1831 }
 0x3ea   :  { %v973_v51 = vmul.f32 %v1832_v7, %v2158_v60  ;;  %v1834_v9 = vpop.eup %1833  ;;  %v1778_v60 = vld [vmem:[%s2288_s6 + $0x8] sm:$0xff]  }
 0x3eb   :  { %v975_v38 = vmul.f32 %v1834_v9, %v2161_v1  ;;  %v1836_v12 = vpop.eup %1835  ;;  %1602 = vmatpush3.bf16.msra.mxu0 %v1778_v60  ;;  %v1779_v1 = vld [vmem:[%s2288_s6 + $0x10] sm:$0xff]  }
 0x3ec   :  { %v977_v10 = vmul.f32 %v1836_v12, %v2164_v61  ;;  %v1838_v43 = vpop.eup %1837  ;;  %1603 = vmatprep.subr.bf16.mxu0 %v1897_v4  ;;  %v1780_v61 = vld [vmem:[%s2288_s6 + $0x18] sm:$0xff]  }
 0x3ed   :  { %989 = vperm.xlu0 %1670, %v969_v16   ;;  %v979_v56 = vmul.f32 %v1838_v43, %v2167_v3  ;;  %v1840_v15 = vpop.eup %1839  ;;  %v1781_v3 = vld [vmem:[%s2288_s6 + $0x20] sm:$0xff]  }
 0x3ee   :  { %v981_v46 = vmul.f32 %v1840_v15, %v2170_v2  ;;  %v1782_v2 = vld [vmem:[%s2288_s6 + $0x28] sm:$0xff]  }
 0x3ef   :  { %1604 = vmatpush3.bf16.msra.mxu0 %v1779_v1 }
 0x3f0   :  { %1605 = vmatprep.subr.bf16.mxu0 %v1897_v4 }
 0x3f1   :  { %994 = vperm.xlu0 %1670, %v971_v29  }
 0x3f3   :  { %1606 = vmatpush3.bf16.msra.mxu0 %v1780_v61 }
 0x3f4   :  { %1607 = vmatprep.subr.bf16.mxu0 %v1897_v4 }
 0x3f5   :  { %999 = vperm.xlu0 %1670, %v973_v51  }
 0x3f7   :  { %1608 = vmatpush3.bf16.msra.mxu0 %v1781_v3 }
 0x3f8   :  { %1609 = vmatprep.subr.bf16.mxu0 %v1897_v4 }
 0x3f9   :  { %1004 = vperm.xlu0 %1670, %v975_v38  }
 0x3fb   :  { %1610 = vmatpush3.bf16.msra.mxu0 %v1782_v2 }
 0x3fc   :  { %1611 = vmatprep.subr.bf16.mxu0 %v1897_v4 }
 0x3fd   :  { %1009 = vperm.xlu0 %1670, %v977_v10  }
 0x3ff   :  { %1612 = vmatpush3.bf16.msra.mxu0 %v1783_v17 }
 0x400   :  { %1613 = vmatprep.subr.bf16.mxu0 %v1897_v4 }
 0x401   :  { %1014 = vperm.xlu0 %1670, %v979_v56  }
 0x403   :  { %1614 = vmatpush3.bf16.msra.mxu0 %v1784_v18 }
 0x404   :  { %1639 = vmatprep.subr.bf16.mxu0 %v1897_v4 }
 0x405   :  { %1019 = vperm.xlu0 %1670, %v981_v46  }
 0x468   :  { %v985_v21 = vpop.permute.xlu0 %984 }
 0x469   :  { %v1022_v25 = vmul.f32 %v1555_v63, %v985_v21 }
 0x46b   :  { %v1030_v34 = vrot.slane %v1022_v25, 4 }
 0x46c   :  { %v990_v23 = vpop.permute.xlu0 %989 }
 0x46d   :  { %v1023_v24 = vmul.f32 %v1556_v8, %v990_v23  ;;  %v1031_v42 = vadd.f32 %v1030_v34, %v1022_v25 }
 0x46f   :  { %v1036_v31 = vrot.slane %v1023_v24, 4  ;;  %v1032_v58 = vrot.slane %v1031_v42, 2 }
 0x470   :  { %v995_v28 = vpop.permute.xlu0 %994 }
 0x471   :  { %v1024_v33 = vmul.f32 %v1559_v5, %v995_v28  ;;  %v1037_v40 = vadd.f32 %v1036_v31, %v1023_v24  ;;  %v1033_v62 = vadd.f32 %v1032_v58, %v1031_v42 }
 0x473   :  { %v1042_v35 = vrot.slane %v1024_v33, 4  ;;  %v1038_v8 = vrot.slane %v1037_v40, 2 }
 0x474   :  { %v1000_v37 = vpop.permute.xlu0 %999 }
 0x475   :  { %v1025_v41 = vmul.f32 %v1560_v22, %v1000_v37  ;;  %v1043_v48 = vadd.f32 %v1042_v35, %v1024_v33  ;;  %v1039_v55 = vadd.f32 %v1038_v8, %v1037_v40 }
 0x477   :  { %v1048_v49 = vrot.slane %v1025_v41, 4  ;;  %v1044_v63 = vrot.slane %v1043_v48, 2  ;;  %v1040_v16 = vrot.slane %v1039_v55, 1 }
 0x478   :  { %v1005_v44 = vpop.permute.xlu0 %1004 }
 0x479   :  { %v1049_v47 = vadd.f32 %v1048_v49, %v1025_v41  ;;  %v1026_v50 = vmul.f32 %v1563_v26, %v1005_v44  ;;  %v1045_v22 = vadd.f32 %v1044_v63, %v1043_v48  ;;  %v1034_v26 = vrot.slane %v1033_v62, 1 }
 0x47a   :  { %v1041_v38 = vadd.f32 %v1040_v16, %v1039_v55  ;;  %v1792_v16 = vld [vmem:[#allocation5 + $0x38] sm:$0xff]  }
 0x47b   :  { %v1050_v52 = vrot.slane %v1049_v47, 2  ;;  %v1054_v5 = vrot.slane %v1026_v50, 4  ;;  %v1046_v29 = vrot.slane %v1045_v22, 1  ;;  %v1035_v56 = vadd.f32 %v1034_v26, %v1033_v62 }
 0x47c   :  { %v1010_v53 = vpop.permute.xlu0 %1009  ;;  %v1096_v61 = vpack.c.bf16 %v1041_v38, %v1041_v38 }
 0x47d   :  { %v1027_v54 = vmul.f32 %v1564_v32, %v1010_v53  ;;  %v1055_v45 = vadd.f32 %v1054_v5, %v1026_v50  ;;  %v1051_v59 = vadd.f32 %v1050_v52, %v1049_v47  ;;  %v1047_v15 = vadd.f32 %v1046_v29, %v1045_v22  ;;  %v1786_v22 = vld [vmem:[#allocation5 + $0x8] sm:$0xff]  }
 0x47e   :  { %v1095_v21 = vpack.c.bf16 %v1035_v56, %v1035_v56  ;;  %v1128_v31 = vunpack.c.l.b16 %v1096_v61 }
 0x47f   :  { %v1060_v57 = vrot.slane %v1027_v54, 4  ;;  %v1056_v0 = vrot.slane %v1055_v45, 2  ;;  %v1052_v27 = vrot.slane %v1051_v59, 1  ;;  %v1097_v18 = vpack.c.bf16 %v1047_v15, %v1047_v15 }
 0x480   :  { %v1015_v14 = vpop.permute.xlu0 %1014  ;;  %v1127_v35 = vunpack.c.l.b16 %v1095_v21 }
 0x481   :  { %v1061_v6 = vadd.f32 %v1060_v57, %v1027_v54  ;;  %v1028_v19 = vmul.f32 %v1567_v36, %v1015_v14  ;;  %v1057_v7 = vadd.f32 %v1056_v0, %v1055_v45  ;;  %v1053_v13 = vadd.f32 %v1052_v27, %v1051_v59  ;;  %v1785_v54 = vld [vmem:[#allocation5] sm:$0xff]   ;;  %v1787_v45 = vld [vmem:[#allocation5 + $0x10] sm:$0xff]   ;;  %v1788_v59 = vld [vmem:[#allocation5 + $0x18] sm:$0xff]  }
 0x482   :  { %v1129_v34 = vunpack.c.l.b16 %v1097_v18  ;;  %v1135_v48 = vsel %vm766_vm1, %v1128_v31, %v1127_v35  ;;  %v1789_v57 = vld [vmem:[#allocation5 + $0x20] sm:$0xff]   ;;  %v1790_v0 = vld [vmem:[#allocation5 + $0x28] sm:$0xff]   ;;  %v1791_v14 = vld [vmem:[#allocation5 + $0x30] sm:$0xff]  }
 0x483   :  { %v1062_v51 = vrot.slane %v1061_v6, 2  ;;  %v1066_v9 = vrot.slane %v1028_v19, 4  ;;  %v1058_v20 = vrot.slane %v1057_v7, 1  ;;  %v1098_v23 = vpack.c.bf16 %v1053_v13, %v1053_v13 }
 0x484   :  { %v1020_v32 = vpop.permute.xlu0 %1019  ;;  %v1136_v8 = vsel %vm768_vm2, %v1129_v34, %v1135_v48 }
 0x485   :  { %v1063_v12 = vadd.f32 %v1062_v51, %v1061_v6  ;;  %v1067_v10 = vadd.f32 %v1066_v9, %v1028_v19  ;;  %v1029_v43 = vmul.f32 %v1568_v39, %v1020_v32  ;;  %v1059_v1 = vadd.f32 %v1058_v20, %v1057_v7  ;;  %v1543_v19 = vld [vmem:[%s2289_s7] ss:$0 sm:$0xff] }
 0x486   :  { %v1130_v37 = vunpack.c.l.b16 %v1098_v23 }
 0x487   :  { %v1064_v46 = vrot.slane %v1063_v12, 1  ;;  %v1068_v60 = vrot.slane %v1067_v10, 2  ;;  %v1072_v36 = vrot.slane %v1029_v43, 4  ;;  %v1099_v28 = vpack.c.bf16 %v1059_v1, %v1059_v1 }
 0x488   :  { %v1137_v58 = vsel %vm770_vm3, %v1130_v37, %v1136_v8 }
 0x489   :  { %v1065_v3 = vadd.f32 %v1064_v46, %v1063_v12  ;;  %v1069_v2 = vadd.f32 %v1068_v60, %v1067_v10  ;;  %v1073_v17 = vadd.f32 %v1072_v36, %v1029_v43  ;;  %v1131_v42 = vunpack.c.l.b16 %v1099_v28 }
 0x48b   :  { %v1070_v24 = vrot.slane %v1069_v2, 1  ;;  %v1074_v25 = vrot.slane %v1073_v17, 2  ;;  %v1100_v30 = vpack.c.bf16 %v1065_v3, %v1065_v3  ;;  %v1138_v50 = vsel %vm772_vm4, %v1131_v42, %v1137_v58 }
 0x48d   :  { %v1071_v39 = vadd.f32 %v1070_v24, %v1069_v2  ;;  %v1075_v33 = vadd.f32 %v1074_v25, %v1073_v17  ;;  %v1132_v49 = vunpack.c.l.b16 %v1100_v30 }
 0x48f   :  { %v1101_v40 = vpack.c.bf16 %v1071_v39, %v1071_v39  ;;  %v1076_v41 = vrot.slane %v1075_v33, 1  ;;  %v1139_v52 = vsel %vm774_vm5, %v1132_v49, %v1138_v50 }
 0x491   :  { %v1077_v44 = vadd.f32 %v1076_v41, %v1075_v33  ;;  %v1133_v47 = vunpack.c.l.b16 %v1101_v40 }
 0x493   :  { %v1102_v63 = vpack.c.bf16 %v1077_v44, %v1077_v44  ;;  %v1140_v53 = vsel %vm776_vm6, %v1133_v47, %v1139_v52 }
 0x495   :  { %v1134_v5 = vunpack.c.l.b16 %v1102_v63 }
 0x497   :  { %v1141_v55 = vsel %vm778_vm7, %v1134_v5, %v1140_v53 }
 0x498   :  { %v1142_v62 = vpack.c.b16 %v1141_v55, %v1141_v55 }
 0x49a   :  { %1616 = vmatmul.mubr.bf16.vlgmr.msra.gmra.mrb[4].mxu0 %v1142_v62 }
 0x49b   :  { %1640 = vmatpush3.bf16.msra.mxu0 %v1785_v54  ;;  %1655 = vmatprep.mubr.msk.bf16.mxu0 %vm1898_vm0, %v1897_v4 }
 0x49c   :  { %1641 = vmatprep.subr.bf16.mxu0 %v1897_v4 }
 0x49f   :  { %1642 = vmatpush3.bf16.msra.mxu0 %v1786_v22 }
 0x4a0   :  { %1643 = vmatprep.subr.bf16.mxu0 %v1897_v4 }
 0x4a3   :  { %1644 = vmatpush3.bf16.msra.mxu0 %v1787_v45 }
 0x4a4   :  { %1645 = vmatprep.subr.bf16.mxu0 %v1897_v4 }
 0x4a7   :  { %1646 = vmatpush3.bf16.msra.mxu0 %v1788_v59 }
 0x4a8   :  { %1647 = vmatprep.subr.bf16.mxu0 %v1897_v4 }
 0x4ab   :  { %1648 = vmatpush3.bf16.msra.mxu0 %v1789_v57 }
 0x4ac   :  { %1649 = vmatprep.subr.bf16.mxu0 %v1897_v4 }
 0x4af   :  { %1650 = vmatpush3.bf16.msra.mxu0 %v1790_v0 }
 0x4b0   :  { %1651 = vmatprep.subr.bf16.mxu0 %v1897_v4 }
 0x4b3   :  { %1652 = vmatpush3.bf16.msra.mxu0 %v1791_v14 }
 0x4b4   :  { %1653 = vmatprep.subr.bf16.mxu0 %v1897_v4  ;;  %v1544_v4 = vld [vmem:[%s2291_s9] ss:$0 sm:$0xff] }
 0x4b7   :  { %1654 = vmatpush3.bf16.msra.mxu0 %v1792_v16 }
 0x56d   :  { %v1226_v6 = vpop.f32.mrb[4].mxu0 }
 0x56e   :  { %v1315_v26 = vadd.f32 %v2134_v11, %v1226_v6  ;;  %v1617_v29 = vpop.f32.mrb[5].mxu0 }
 0x56f   :  { %v1229_v7 = vpop.f32.mrb[6].mxu0 }
 0x570   :  { %v1327_v27 = vadd.f32 %v1543_v19, %v1315_v26  ;;  %v1618_v51 = vpop.f32.mrb[7].mxu0 }
 0x572   :  { %1841 = vtanh.f32 %v1327_v27 }
 0x57c   :  { %v1842_v9 = vpop.eup %1841 }
 0x57d   :  { %v1329_v20 = vpack.c.bf16 %v1842_v9, %v1842_v9 }
 0x57f   :  { %1330 = vst [vmem:[#allocation2] sm:$0xf] %v1329_v20 }
 0x586   :  { %v1331_v32 = vld [vmem:[#allocation2] sm:$0xf] }
 0x587   :  { %1656 = vmatmul.mubr.bf16.vlgmr.msra.gmra.mrb[8].mxu0 %v1331_v32 }
 0x65a   :  { %v1437_v38 = vpop.f32.mrb[8].mxu0 }
 0x65b   :  { %v1438_v12 = vadd.f32 %v1544_v4, %v1437_v38  ;;  %v1657_v10 = vpop.f32.mrb[9].mxu0 }
 0x65c   :  { %v1440_v43 = vpop.f32.mrb[10].mxu0 }
 0x65d   :  { %1443 = vst [vmem:[%s2292_s10] sm:$0xff] %v1438_v12  ;;  %v1658_v11 = vpop.f32.mrb[11].mxu0 }
 0x65e   :  { %1456 = vsyncpa [#allocation4], 1 }
 0x65f   :  { %1457 = vsyncpa [#allocation6], 1 }

</bundles_post_ra>
